<compile_context>
chip_gen: v5e
topology: v5e:2x2
jax: 0.10.0
libtpu: 0.0.40
codegen_flags: <defaults>
</compile_context>

<pallas_src>
import numpy as np
import jax
import jax.numpy as jnp
from jax import lax
from jax.experimental import pallas as pl
from jax.experimental.pallas import tpu as pltpu


# ----------------------------------------------------------------------------
# JPEG constants (standard quantization tables, quality ~50) and 8x8 DCT matrix
# ----------------------------------------------------------------------------

STD_LUMA_Q = np.array(
    [[16, 11, 10, 16, 24, 40, 51, 61],
     [12, 12, 14, 19, 26, 58, 60, 55],
     [14, 13, 16, 24, 40, 57, 69, 56],
     [14, 17, 22, 29, 51, 87, 80, 62],
     [18, 22, 37, 56, 68, 109, 103, 77],
     [24, 35, 55, 64, 81, 104, 113, 92],
     [49, 64, 78, 87, 103, 121, 120, 101],
     [72, 92, 95, 98, 112, 100, 103, 99]], dtype=np.float32)

STD_CHROMA_Q = np.array(
    [[17, 18, 24, 47, 99, 99, 99, 99],
     [18, 21, 26, 66, 99, 99, 99, 99],
     [24, 26, 56, 99, 99, 99, 99, 99],
     [47, 66, 99, 99, 99, 99, 99, 99],
     [99, 99, 99, 99, 99, 99, 99, 99],
     [99, 99, 99, 99, 99, 99, 99, 99],
     [99, 99, 99, 99, 99, 99, 99, 99],
     [99, 99, 99, 99, 99, 99, 99, 99]], dtype=np.float32)


def dct_matrix_8():
    n = np.arange(8, dtype=np.float64)
    D = np.cos((2.0 * n[None, :] + 1.0) * n[:, None] * np.pi / 16.0)
    D[0, :] *= 1.0 / np.sqrt(2.0)
    D *= np.sqrt(2.0 / 8.0)
    return D.astype(np.float32)          # orthonormal: D @ D.T == I


# ----------------------------------------------------------------------------
# Wrapper-side constant folding (done ONCE at init, outside the kernel)
# ----------------------------------------------------------------------------

def build_conv_band(conv_w, W):
    """Banded matrix B implementing the horizontal pass of a 3x3/pad=1 conv.

    Input layout is channel-stacked columns (H, 3W), col = c*W + w.
      Hrow[h, (ky*OC + oc)*W + w] = sum_{c,kx} X[h, c*W + (w+kx-1)] * conv_w[oc,c,ky,kx]
    Zero horizontal padding is implicit (out-of-range cols never contribute).
    """
    OC, C, KH, KW = conv_w.shape
    B = np.zeros((C * W, KH * OC * W), dtype=np.float32)
    for c in range(C):
        for ky in range(KH):
            for kx in range(KW):
                for w in range(W):
                    j = w + kx - 1
                    if 0 <= j < W:
                        cols = (ky * OC + np.arange(OC)) * W + w
                        B[c * W + j, cols] += conv_w[:, c, ky, kx]
    return B


def init_params(key, c_in=3, hidden=16, num_classes=10, H=16, W=16,
                images_per_step=1):
    assert H % 8 == 0 and W % 8 == 0 and c_in == 3
    B = images_per_step
    k1, k2, k3, k4 = jax.random.split(key, 4)
    conv_w = jax.random.normal(k1, (hidden, c_in, 3, 3), jnp.float32) * 0.1
    conv_b = jax.random.normal(k2, (hidden,), jnp.float32) * 0.01
    fc_w = jax.random.normal(k3, (num_classes, hidden), jnp.float32) * 0.1
    fc_b = jax.random.normal(k4, (num_classes,), jnp.float32) * 0.01

    D = dct_matrix_8()
    A_H = np.kron(np.eye(H // 8, dtype=np.float32), D)              # (H, H)
    A_W = np.kron(np.eye(W // 8, dtype=np.float32), D)              # (W, W)
    A3W = np.kron(np.eye(3, dtype=np.float32), A_W)                 # (3W, 3W)

    # forward RGB->YCbCr (no offsets) and inverse YCbCr->RGB matrices
    M_fwd = np.array([[0.299, 0.587, 0.114],
                      [-0.168736, -0.331264, 0.5],
                      [0.5, -0.418688, -0.081312]], dtype=np.float32)
    C_inv = np.array([[1.0, 0.0, 1.402],
                      [1.0, -0.344136, -0.714136],
                      [1.0, 1.772, 0.0]], dtype=np.float32)

    # forward:  d = A_H @ (x*255) @ R_fwd + D0   (colour + level shift + 2D DCT)
    r_fwd = np.kron(M_fwd.T, A_W.T)                                  # (3W, 3W)
    off = np.zeros((H, 3 * W), np.float32)
    off[:, :W] = -128.0                         # level shift (Y: -128, Cb/Cr: net 0)
    d0 = A_H @ off @ A3W.T                                           # (H, 3W)
    # inverse:  rgb = A_H^T @ dq @ G_right + 128 (inverse DCT + YCbCr->RGB folded)
    g_right = np.kron(C_inv.T, A_W)                                  # (3W, 3W)

    qy = np.tile(STD_LUMA_Q, (H // 8, W // 8)).astype(np.float32)
    qc = np.tile(STD_CHROMA_Q, (H // 8, W // 8)).astype(np.float32)
    q_cols = np.concatenate([qy, qc, qc], axis=1)                    # (H, 3W)

    eyeB = np.eye(B, dtype=np.float32)
    ah_big = np.kron(eyeB, A_H)                                      # (BH, BH)
    s0 = np.eye(H, k=-1, dtype=np.float32)   # down-shift (top row zero padding)
    s2 = np.eye(H, k=1, dtype=np.float32)    # up-shift   (bottom row zero padding)
    pool = np.kron(eyeB, np.ones((1, H), np.float32)) / float(H * W)  # (B, BH)

    cw = np.asarray(conv_w)
    cbv = np.asarray(conv_b)
    fw = np.asarray(fc_w)
    fbv = np.asarray(fc_b)

    params = {
        "r_fwd": jnp.asarray(r_fwd),                                 # (3W, 3W)
        "ah_big": jnp.asarray(ah_big),                               # (BH, BH)
        "aht_big": jnp.asarray(np.ascontiguousarray(ah_big.T)),      # (BH, BH)
        "d0": jnp.asarray(np.tile(d0, (B, 1))),                      # (BH, 3W)
        "q_recip": jnp.asarray(np.tile(1.0 / q_cols, (B, 1))),       # (BH, 3W)
        "q_tab": jnp.asarray(np.tile(q_cols, (B, 1))),               # (BH, 3W)
        "g_right": jnp.asarray(g_right),                             # (3W, 3W)
        "s0_big": jnp.asarray(np.kron(eyeB, s0)),                    # (BH, BH)
        "s2_big": jnp.asarray(np.kron(eyeB, s2)),                    # (BH, BH)
        "conv_band": jnp.asarray(build_conv_band(cw, W)).astype(jnp.bfloat16),
        "bias_rep": jnp.asarray(np.repeat(cbv, W)[None, :]),         # (1, hid*W)
        "pool": jnp.asarray(pool),                                   # (B, BH)
        "fc_big": jnp.asarray(np.repeat(fw.T, W, axis=0)),           # (hid*W, cls)
        "fc_b": jnp.asarray(fbv[None, :]),                           # (1, cls)
    }
    raw = {"conv_w": conv_w, "conv_b": conv_b, "fc_w": fc_w, "fc_b": fc_b,
           "dct_AH": jnp.asarray(A_H), "q_y": jnp.asarray(qy), "q_c": jnp.asarray(qc)}
    return params, raw


# ----------------------------------------------------------------------------
# The single fused Pallas kernel: B images (one grid step) per invocation
# ----------------------------------------------------------------------------

def _fused_forward_kernel(x_ref, rfwd_ref, ah_ref, aht_ref, d0_ref, qrecip_ref,
                          q_ref, gright_ref, s0_ref, s2_ref, bconv_ref,
                          cbias_ref, pool_ref, fbig_ref, fcb_ref, o_ref):
    f32 = jnp.float32
    ocw = cbias_ref.shape[1]                     # hidden * W (conv cols, (oc, w))

    # ---------------- JPEG layer (values in [0,1] -> [0,255]) -----------------
    # colour transform + level shift + blockwise 2-D DCT, all folded:
    #   d = A_H @ (x*255) @ R_fwd + D0
    x255 = x_ref[...] * 255.0                                         # (BH, 3W)
    t = jnp.dot(x255, rfwd_ref[...], preferred_element_type=f32)      # (BH, 3W)
    d = jnp.dot(ah_ref[...], t, preferred_element_type=f32) + d0_ref[...]
    # quantize / round / dequantize (reciprocal table instead of f32 divide)
    # TODO(synk): hard rounding == forward pass of the usual straight-through
    # differentiable-JPEG rounding; no chroma subsampling is applied.
    dq = jnp.round(d * qrecip_ref[...]) * q_ref[...]
    # inverse DCT + YCbCr->RGB folded:  rgb = A_H^T @ dq @ G_right + 128
    u = jnp.dot(dq, gright_ref[...], preferred_element_type=f32)      # (BH, 3W)
    rgb = jnp.dot(aht_ref[...], u, preferred_element_type=f32) + 128.0
    rgb = jnp.clip(rgb, 0.0, 255.0) * (1.0 / 255.0)                   # back to [0,1]

    # -------- conv3x3(pad=1): one banded K=3W matmul (bf16 operands) ----------
    hrow = jnp.dot(rgb.astype(jnp.bfloat16), bconv_ref[...],
                   preferred_element_type=f32)                        # (BH, 3*ocw)
    # vertical ky accumulation via tiny precomputed shift matrices (S1 = I)
    conv = (jnp.dot(s0_ref[...], hrow[:, :ocw], preferred_element_type=f32)
            + hrow[:, ocw:2 * ocw]
            + jnp.dot(s2_ref[...], hrow[:, 2 * ocw:], preferred_element_type=f32)
            + cbias_ref[...])                                         # (BH, ocw)
    act = jnp.maximum(conv, 0.0)

    # ---------------- GAP + FC fused into two tiny matmuls --------------------
    pooled = jnp.dot(pool_ref[...], act, preferred_element_type=f32)  # (B, ocw)
    logits = jnp.dot(pooled, fbig_ref[...], preferred_element_type=f32) + fcb_ref[...]
    o_ref[0] = logits.astype(o_ref.dtype)                             # (B, classes)


# ----------------------------------------------------------------------------
# CustomModel.forward  ==  underlying_model(jpeg_layer(x))  — ONE pallas_call
# ----------------------------------------------------------------------------

def custom_model_forward(x, params):
    N, C, H, W = x.shape
    n_cls = params["fc_b"].shape[1]
    BH = params["ah_big"].shape[0]
    B = BH // H                                   # images per grid step (static)
    assert N % B == 0, "batch must be divisible by images_per_step"
    steps = N // B
    W3 = C * W

    # layout plumbing only: (N,C,H,W) -> (N*H, 3W), row=(n,h), col=(c,w)
    x2 = jnp.transpose(x, (0, 2, 1, 3)).reshape(N * H, W3)

    def const(arr):
        nd = arr.ndim
        return pl.BlockSpec(arr.shape, lambda s, _nd=nd: (0,) * _nd)

    out = pl.pallas_call(
        _fused_forward_kernel,
        out_shape=jax.ShapeDtypeStruct((steps, B, n_cls), jnp.float32),
        grid=(steps,),
        in_specs=[
            pl.BlockSpec((BH, W3), lambda s: (s, 0)),
            const(params["r_fwd"]), const(params["ah_big"]), const(params["aht_big"]),
            const(params["d0"]), const(params["q_recip"]), const(params["q_tab"]),
            const(params["g_right"]), const(params["s0_big"]), const(params["s2_big"]),
            const(params["conv_band"]), const(params["bias_rep"]),
            const(params["pool"]), const(params["fc_big"]), const(params["fc_b"]),
        ],
        out_specs=pl.BlockSpec((1, B, n_cls), lambda s: (s, 0, 0)),
        compiler_params=pltpu.CompilerParams(
            dimension_semantics=("parallel",)),   # >=2 steps -> both v7x TCs busy
    )(x2, params["r_fwd"], params["ah_big"], params["aht_big"], params["d0"],
      params["q_recip"], params["q_tab"], params["g_right"], params["s0_big"],
      params["s2_big"], params["conv_band"], params["bias_rep"], params["pool"],
      params["fc_big"], params["fc_b"])
    return out.reshape(N, n_cls)


# ----------------------------------------------------------------------------
# Pure-JAX reference (independent formulation) for a correctness check
# ----------------------------------------------------------------------------

def reference_forward(x, raw):
    hp = lax.Precision.HIGHEST
    A = raw["dct_AH"]
    x255 = x * 255.0
    r, g, b = x255[:, 0], x255[:, 1], x255[:, 2]
    y = 0.299 * r + 0.587 * g + 0.114 * b
    cb = -0.168736 * r - 0.331264 * g + 0.5 * b + 128.0
    cr = 0.5 * r - 0.418688 * g - 0.081312 * b + 128.0

    def jchan(c, q):
        d = jnp.einsum("ij,njk,lk->nil", A, c - 128.0, A, precision=hp)
        dqv = jnp.round(d / q) * q
        return jnp.einsum("ji,njk,kl->nil", A, dqv, A, precision=hp) + 128.0

    yq, cbq, crq = jchan(y, raw["q_y"]), jchan(cb, raw["q_c"]), jchan(cr, raw["q_c"])
    rr = yq + 1.402 * (crq - 128.0)
    gg = yq - 0.344136 * (cbq - 128.0) - 0.714136 * (crq - 128.0)
    bb = yq + 1.772 * (cbq - 128.0)
    xj = jnp.clip(jnp.stack([rr, gg, bb], axis=1), 0.0, 255.0) / 255.0

    conv = lax.conv_general_dilated(
        xj, raw["conv_w"], (1, 1), "SAME",
        dimension_numbers=("NCHW", "OIHW", "NCHW"), precision=hp)
    act = jnp.maximum(conv + raw["conv_b"][None, :, None, None], 0.0)
    pooled = act.mean(axis=(2, 3))
    return jnp.dot(pooled, raw["fc_w"].T, precision=hp) + raw["fc_b"]


if __name__ == "__main__":
    key = jax.random.PRNGKey(0)
    kx_, kp = jax.random.split(key)
    N, C, H, W = 2, 3, 16, 16
    x = jax.random.uniform(kx_, (N, C, H, W), jnp.float32)       # NCHW images in [0,1]
    # images_per_step=1 keeps grid=(2,) at N=2 so both v7x TensorCores get work;
    # for larger N pick a divisor of N (e.g. 8) to amortize the ~0.35us/step cost.
    params, raw = init_params(kp, c_in=C, hidden=16, num_classes=10, H=H, W=W,
                              images_per_step=1)

    fwd = jax.jit(custom_model_forward)
    out = jax.block_until_ready(fwd(x, params))
    assert out.shape == (N, 10) and out.dtype == jnp.float32
    assert bool(jnp.all(jnp.isfinite(out)))

    # Loose tolerance: MXU-vs-XLA f32 accumulation differences can flip a few of
    # the hard JPEG round() decisions (each flip perturbs logits by ~1e-3), and
    # the post-round conv band matmul runs in bf16.
    ref = reference_forward(x, raw)
    np.testing.assert_allclose(np.asarray(out), np.asarray(ref), rtol=0.0, atol=5e-2)

    print("KERNEL_OK")
</pallas_src>

<mosaic_0001>
module attributes {stable_mosaic.version = 11 : i64} {
  func.func @_fused_forward_kernel(%arg0: i32, %arg1: memref<16x48xf32, #tpu.memory_space<vmem>>, %arg2: memref<48x48xf32, #tpu.memory_space<vmem>>, %arg3: memref<16x16xf32, #tpu.memory_space<vmem>>, %arg4: memref<16x16xf32, #tpu.memory_space<vmem>>, %arg5: memref<16x48xf32, #tpu.memory_space<vmem>>, %arg6: memref<16x48xf32, #tpu.memory_space<vmem>>, %arg7: memref<16x48xf32, #tpu.memory_space<vmem>>, %arg8: memref<48x48xf32, #tpu.memory_space<vmem>>, %arg9: memref<16x16xf32, #tpu.memory_space<vmem>>, %arg10: memref<16x16xf32, #tpu.memory_space<vmem>>, %arg11: memref<48x768xbf16, #tpu.memory_space<vmem>>, %arg12: memref<1x256xf32, #tpu.memory_space<vmem>>, %arg13: memref<1x16xf32, #tpu.memory_space<vmem>>, %arg14: memref<256x10xf32, #tpu.memory_space<vmem>>, %arg15: memref<1x10xf32, #tpu.memory_space<vmem>>, %arg16: memref<1x1x10xf32, #tpu.memory_space<vmem>>) attributes {dimension_semantics = [#tpu.dimension_semantics<parallel>], iteration_bounds = array<i64: 2>, scalar_prefetch = 0 : i64, scratch_operands = 0 : i64, tpu.core_type = #tpu.core_type<tc>, window_params = [{transform_indices = @transform_0, window_bounds = array<i64: 16, 48>}, {pipeline_mode = #tpu.pipeline_mode<synchronous>, transform_indices = @transform_1, window_bounds = array<i64: 48, 48>}, {pipeline_mode = #tpu.pipeline_mode<synchronous>, transform_indices = @transform_2, window_bounds = array<i64: 16, 16>}, {pipeline_mode = #tpu.pipeline_mode<synchronous>, transform_indices = @transform_3, window_bounds = array<i64: 16, 16>}, {pipeline_mode = #tpu.pipeline_mode<synchronous>, transform_indices = @transform_4, window_bounds = array<i64: 16, 48>}, {pipeline_mode = #tpu.pipeline_mode<synchronous>, transform_indices = @transform_5, window_bounds = array<i64: 16, 48>}, {pipeline_mode = #tpu.pipeline_mode<synchronous>, transform_indices = @transform_6, window_bounds = array<i64: 16, 48>}, {pipeline_mode = #tpu.pipeline_mode<synchronous>, transform_indices = @transform_7, window_bounds = array<i64: 48, 48>}, {pipeline_mode = #tpu.pipeline_mode<synchronous>, transform_indices = @transform_8, window_bounds = array<i64: 16, 16>}, {pipeline_mode = #tpu.pipeline_mode<synchronous>, transform_indices = @transform_9, window_bounds = array<i64: 16, 16>}, {pipeline_mode = #tpu.pipeline_mode<synchronous>, transform_indices = @transform_10, window_bounds = array<i64: 48, 768>}, {pipeline_mode = #tpu.pipeline_mode<synchronous>, transform_indices = @transform_11, window_bounds = array<i64: 1, 256>}, {pipeline_mode = #tpu.pipeline_mode<synchronous>, transform_indices = @transform_12, window_bounds = array<i64: 1, 16>}, {pipeline_mode = #tpu.pipeline_mode<synchronous>, transform_indices = @transform_13, window_bounds = array<i64: 256, 10>}, {pipeline_mode = #tpu.pipeline_mode<synchronous>, transform_indices = @transform_14, window_bounds = array<i64: 1, 10>}, {transform_indices = @transform_15, window_bounds = array<i64: 1, 1, 10>}]} {
    %c0 = arith.constant 0 : index
    %c0_0 = arith.constant 0 : index
    %0 = vector.load %arg1[%c0, %c0_0] : memref<16x48xf32, #tpu.memory_space<vmem>>, vector<16x48xf32>
    %cst = arith.constant 2.550000e+02 : f32
    %1 = vector.broadcast %cst : f32 to vector<16x48xf32>
    %2 = arith.mulf %0, %1 : vector<16x48xf32>
    %c0_1 = arith.constant 0 : index
    %c0_2 = arith.constant 0 : index
    %3 = vector.load %arg2[%c0_1, %c0_2] : memref<48x48xf32, #tpu.memory_space<vmem>>, vector<48x48xf32>
    %cst_3 = arith.constant dense<0.000000e+00> : vector<16x48xf32>
    %4 = tpu.matmul %2, %3, %cst_3 {dimension_numbers = #tpu.dot_dimension_numbers<[1], [0], [0], [1], [0, 0, 1, 1], [], []>} : vector<16x48xf32>, vector<48x48xf32>, vector<16x48xf32> -> vector<16x48xf32>
    %c0_4 = arith.constant 0 : index
    %c0_5 = arith.constant 0 : index
    %5 = vector.load %arg3[%c0_4, %c0_5] : memref<16x16xf32, #tpu.memory_space<vmem>>, vector<16x16xf32>
    %cst_6 = arith.constant dense<0.000000e+00> : vector<16x48xf32>
    %6 = tpu.matmul %5, %4, %cst_6 {dimension_numbers = #tpu.dot_dimension_numbers<[1], [0], [0], [1], [0, 0, 1, 1], [], []>} : vector<16x16xf32>, vector<16x48xf32>, vector<16x48xf32> -> vector<16x48xf32>
    %c0_7 = arith.constant 0 : index
    %c0_8 = arith.constant 0 : index
    %7 = vector.load %arg5[%c0_7, %c0_8] : memref<16x48xf32, #tpu.memory_space<vmem>>, vector<16x48xf32>
    %8 = arith.addf %6, %7 : vector<16x48xf32>
    %c0_9 = arith.constant 0 : index
    %c0_10 = arith.constant 0 : index
    %9 = vector.load %arg6[%c0_9, %c0_10] : memref<16x48xf32, #tpu.memory_space<vmem>>, vector<16x48xf32>
    %10 = arith.mulf %8, %9 : vector<16x48xf32>
    %11 = math.roundeven %10 : vector<16x48xf32>
    %c0_11 = arith.constant 0 : index
    %c0_12 = arith.constant 0 : index
    %12 = vector.load %arg7[%c0_11, %c0_12] : memref<16x48xf32, #tpu.memory_space<vmem>>, vector<16x48xf32>
    %13 = arith.mulf %11, %12 : vector<16x48xf32>
    %c0_13 = arith.constant 0 : index
    %c0_14 = arith.constant 0 : index
    %14 = vector.load %arg8[%c0_13, %c0_14] : memref<48x48xf32, #tpu.memory_space<vmem>>, vector<48x48xf32>
    %cst_15 = arith.constant dense<0.000000e+00> : vector<16x48xf32>
    %15 = tpu.matmul %13, %14, %cst_15 {dimension_numbers = #tpu.dot_dimension_numbers<[1], [0], [0], [1], [0, 0, 1, 1], [], []>} : vector<16x48xf32>, vector<48x48xf32>, vector<16x48xf32> -> vector<16x48xf32>
    %c0_16 = arith.constant 0 : index
    %c0_17 = arith.constant 0 : index
    %16 = vector.load %arg4[%c0_16, %c0_17] : memref<16x16xf32, #tpu.memory_space<vmem>>, vector<16x16xf32>
    %cst_18 = arith.constant dense<0.000000e+00> : vector<16x48xf32>
    %17 = tpu.matmul %16, %15, %cst_18 {dimension_numbers = #tpu.dot_dimension_numbers<[1], [0], [0], [1], [0, 0, 1, 1], [], []>} : vector<16x16xf32>, vector<16x48xf32>, vector<16x48xf32> -> vector<16x48xf32>
    %cst_19 = arith.constant 1.280000e+02 : f32
    %18 = vector.broadcast %cst_19 : f32 to vector<16x48xf32>
    %19 = arith.addf %17, %18 : vector<16x48xf32>
    %cst_20 = arith.constant 0.000000e+00 : f32
    %cst_21 = arith.constant 2.550000e+02 : f32
    %20 = vector.broadcast %cst_20 : f32 to vector<16x48xf32>
    %21 = arith.maximumf %20, %19 : vector<16x48xf32>
    %22 = vector.broadcast %cst_21 : f32 to vector<16x48xf32>
    %23 = arith.minimumf %22, %21 : vector<16x48xf32>
    %cst_22 = arith.constant 0.00392156886 : f32
    %24 = vector.broadcast %cst_22 : f32 to vector<16x48xf32>
    %25 = arith.mulf %23, %24 : vector<16x48xf32>
    %26 = arith.truncf %25 : vector<16x48xf32> to vector<16x48xbf16>
    %c0_23 = arith.constant 0 : index
    %c0_24 = arith.constant 0 : index
    %27 = vector.load %arg11[%c0_23, %c0_24] : memref<48x768xbf16, #tpu.memory_space<vmem>>, vector<48x768xbf16>
    %cst_25 = arith.constant dense<0.000000e+00> : vector<16x768xf32>
    %28 = tpu.matmul %26, %27, %cst_25 {dimension_numbers = #tpu.dot_dimension_numbers<[1], [0], [0], [1], [0, 0, 1, 1], [], []>} : vector<16x48xbf16>, vector<48x768xbf16>, vector<16x768xf32> -> vector<16x768xf32>
    %c0_26 = arith.constant 0 : index
    %c0_27 = arith.constant 0 : index
    %29 = vector.load %arg9[%c0_26, %c0_27] : memref<16x16xf32, #tpu.memory_space<vmem>>, vector<16x16xf32>
    %30 = vector.extract_strided_slice %28 {offsets = [0, 0], sizes = [16, 256], strides = [1, 1]} : vector<16x768xf32> to vector<16x256xf32>
    %cst_28 = arith.constant dense<0.000000e+00> : vector<16x256xf32>
    %31 = tpu.matmul %29, %30, %cst_28 {dimension_numbers = #tpu.dot_dimension_numbers<[1], [0], [0], [1], [0, 0, 1, 1], [], []>} : vector<16x16xf32>, vector<16x256xf32>, vector<16x256xf32> -> vector<16x256xf32>
    %32 = vector.extract_strided_slice %28 {offsets = [0, 256], sizes = [16, 256], strides = [1, 1]} : vector<16x768xf32> to vector<16x256xf32>
    %33 = arith.addf %31, %32 : vector<16x256xf32>
    %c0_29 = arith.constant 0 : index
    %c0_30 = arith.constant 0 : index
    %34 = vector.load %arg10[%c0_29, %c0_30] : memref<16x16xf32, #tpu.memory_space<vmem>>, vector<16x16xf32>
    %35 = vector.extract_strided_slice %28 {offsets = [0, 512], sizes = [16, 256], strides = [1, 1]} : vector<16x768xf32> to vector<16x256xf32>
    %cst_31 = arith.constant dense<0.000000e+00> : vector<16x256xf32>
    %36 = tpu.matmul %34, %35, %cst_31 {dimension_numbers = #tpu.dot_dimension_numbers<[1], [0], [0], [1], [0, 0, 1, 1], [], []>} : vector<16x16xf32>, vector<16x256xf32>, vector<16x256xf32> -> vector<16x256xf32>
    %37 = arith.addf %33, %36 : vector<16x256xf32>
    %c0_32 = arith.constant 0 : index
    %c0_33 = arith.constant 0 : index
    %38 = vector.load %arg12[%c0_32, %c0_33] : memref<1x256xf32, #tpu.memory_space<vmem>>, vector<1x256xf32>
    %39 = vector.broadcast %38 : vector<1x256xf32> to vector<16x256xf32>
    %40 = arith.addf %37, %39 : vector<16x256xf32>
    %cst_34 = arith.constant 0.000000e+00 : f32
    %41 = vector.broadcast %cst_34 : f32 to vector<16x256xf32>
    %42 = arith.maximumf %40, %41 : vector<16x256xf32>
    %c0_35 = arith.constant 0 : index
    %c0_36 = arith.constant 0 : index
    %43 = vector.load %arg13[%c0_35, %c0_36] : memref<1x16xf32, #tpu.memory_space<vmem>>, vector<1x16xf32>
    %cst_37 = arith.constant dense<0.000000e+00> : vector<1x256xf32>
    %44 = tpu.matmul %43, %42, %cst_37 {dimension_numbers = #tpu.dot_dimension_numbers<[1], [0], [0], [1], [0, 0, 1, 1], [], []>} : vector<1x16xf32>, vector<16x256xf32>, vector<1x256xf32> -> vector<1x256xf32>
    %c0_38 = arith.constant 0 : index
    %c0_39 = arith.constant 0 : index
    %45 = vector.load %arg14[%c0_38, %c0_39] : memref<256x10xf32, #tpu.memory_space<vmem>>, vector<256x10xf32>
    %cst_40 = arith.constant dense<0.000000e+00> : vector<1x10xf32>
    %46 = tpu.matmul %44, %45, %cst_40 {dimension_numbers = #tpu.dot_dimension_numbers<[1], [0], [0], [1], [0, 0, 1, 1], [], []>} : vector<1x256xf32>, vector<256x10xf32>, vector<1x10xf32> -> vector<1x10xf32>
    %c0_41 = arith.constant 0 : index
    %c0_42 = arith.constant 0 : index
    %47 = vector.load %arg15[%c0_41, %c0_42] : memref<1x10xf32, #tpu.memory_space<vmem>>, vector<1x10xf32>
    %48 = arith.addf %46, %47 : vector<1x10xf32>
    %c0_43 = arith.constant 0 : index
    %c0_44 = arith.constant 0 : index
    %c0_45 = arith.constant 0 : index
    %49 = vector.load %arg16[%c0_43, %c0_44, %c0_45] : memref<1x1x10xf32, #tpu.memory_space<vmem>>, vector<1x1x10xf32>
    %50 = vector.shape_cast %49 : vector<1x1x10xf32> to vector<1x10xf32>
    %51 = vector.shape_cast %48 : vector<1x10xf32> to vector<1x1x10xf32>
    tpu.vector_store %arg16[%c0_43, %c0_44, %c0_45], %51 {strides = array<i32>} : memref<1x1x10xf32, #tpu.memory_space<vmem>>, vector<1x1x10xf32>,
    return
  }
  func.func @transform_0(%arg0: i32) -> (i32, i32) {
    %c0_i32 = arith.constant 0 : i32
    %c0_i32_0 = arith.constant 0 : i32
    return %arg0, %c0_i32 : i32, i32
  }
  func.func @transform_1(%arg0: i32) -> (i32, i32) {
    %c0_i32 = arith.constant 0 : i32
    %c0_i32_0 = arith.constant 0 : i32
    %c0_i32_1 = arith.constant 0 : i32
    return %c0_i32, %c0_i32_0 : i32, i32
  }
  func.func @transform_2(%arg0: i32) -> (i32, i32) {
    %c0_i32 = arith.constant 0 : i32
    %c0_i32_0 = arith.constant 0 : i32
    %c0_i32_1 = arith.constant 0 : i32
    return %c0_i32, %c0_i32_0 : i32, i32
  }
  func.func @transform_3(%arg0: i32) -> (i32, i32) {
    %c0_i32 = arith.constant 0 : i32
    %c0_i32_0 = arith.constant 0 : i32
    %c0_i32_1 = arith.constant 0 : i32
    return %c0_i32, %c0_i32_0 : i32, i32
  }
  func.func @transform_4(%arg0: i32) -> (i32, i32) {
    %c0_i32 = arith.constant 0 : i32
    %c0_i32_0 = arith.constant 0 : i32
    %c0_i32_1 = arith.constant 0 : i32
    return %c0_i32, %c0_i32_0 : i32, i32
  }
  func.func @transform_5(%arg0: i32) -> (i32, i32) {
    %c0_i32 = arith.constant 0 : i32
    %c0_i32_0 = arith.constant 0 : i32
    %c0_i32_1 = arith.constant 0 : i32
    return %c0_i32, %c0_i32_0 : i32, i32
  }
  func.func @transform_6(%arg0: i32) -> (i32, i32) {
    %c0_i32 = arith.constant 0 : i32
    %c0_i32_0 = arith.constant 0 : i32
    %c0_i32_1 = arith.constant 0 : i32
    return %c0_i32, %c0_i32_0 : i32, i32
  }
  func.func @transform_7(%arg0: i32) -> (i32, i32) {
    %c0_i32 = arith.constant 0 : i32
    %c0_i32_0 = arith.constant 0 : i32
    %c0_i32_1 = arith.constant 0 : i32
    return %c0_i32, %c0_i32_0 : i32, i32
  }
  func.func @transform_8(%arg0: i32) -> (i32, i32) {
    %c0_i32 = arith.constant 0 : i32
    %c0_i32_0 = arith.constant 0 : i32
    %c0_i32_1 = arith.constant 0 : i32
    return %c0_i32, %c0_i32_0 : i32, i32
  }
  func.func @transform_9(%arg0: i32) -> (i32, i32) {
    %c0_i32 = arith.constant 0 : i32
    %c0_i32_0 = arith.constant 0 : i32
    %c0_i32_1 = arith.constant 0 : i32
    return %c0_i32, %c0_i32_0 : i32, i32
  }
  func.func @transform_10(%arg0: i32) -> (i32, i32) {
    %c0_i32 = arith.constant 0 : i32
    %c0_i32_0 = arith.constant 0 : i32
    %c0_i32_1 = arith.constant 0 : i32
    return %c0_i32, %c0_i32_0 : i32, i32
  }
  func.func @transform_11(%arg0: i32) -> (i32, i32) {
    %c0_i32 = arith.constant 0 : i32
    %c0_i32_0 = arith.constant 0 : i32
    %c0_i32_1 = arith.constant 0 : i32
    return %c0_i32, %c0_i32_0 : i32, i32
  }
  func.func @transform_12(%arg0: i32) -> (i32, i32) {
    %c0_i32 = arith.constant 0 : i32
    %c0_i32_0 = arith.constant 0 : i32
    %c0_i32_1 = arith.constant 0 : i32
    return %c0_i32, %c0_i32_0 : i32, i32
  }
  func.func @transform_13(%arg0: i32) -> (i32, i32) {
    %c0_i32 = arith.constant 0 : i32
    %c0_i32_0 = arith.constant 0 : i32
    %c0_i32_1 = arith.constant 0 : i32
    return %c0_i32, %c0_i32_0 : i32, i32
  }
  func.func @transform_14(%arg0: i32) -> (i32, i32) {
    %c0_i32 = arith.constant 0 : i32
    %c0_i32_0 = arith.constant 0 : i32
    %c0_i32_1 = arith.constant 0 : i32
    return %c0_i32, %c0_i32_0 : i32, i32
  }
  func.func @transform_15(%arg0: i32) -> (i32, i32, i32) {
    %c0_i32 = arith.constant 0 : i32
    %c0_i32_0 = arith.constant 0 : i32
    %c0_i32_1 = arith.constant 0 : i32
    return %arg0, %c0_i32, %c0_i32_0 : i32, i32, i32
  }
}

</mosaic_0001>

<bundles_post_ra>
// kernel: custom_model_forward.1
= control target key start
LH: loop header
LB: loop body
LE: loop exit
PB: predicated region body
PF: predicated region fallthrough
CT: control target
= control target key end

     0   :  { %s1887_s0 = inlined_call_operand.vmem [shape: f32[32,48], index: 0, kind: input, shape index: {}]   ;;  %s1888_s1 = inlined_call_operand.vmem [shape: f32[48,48], index: 1, kind: input, shape index: {}]   ;;  %s1889_s2 = inlined_call_operand.vmem [shape: f32[16,16], index: 2, kind: input, shape index: {}]   ;;  %s1890_s3 = inlined_call_operand.vmem [shape: f32[16,16], index: 3, kind: input, shape index: {}]   ;;  %s1891_s4 = inlined_call_operand.vmem [shape: f32[16,48], index: 4, kind: input, shape index: {}]   ;;  %s1892_s5 = inlined_call_operand.vmem [shape: f32[16,48], index: 5, kind: input, shape index: {}]   ;;  %s1893_s6 = inlined_call_operand.vmem [shape: f32[16,48], index: 6, kind: input, shape index: {}]   ;;  %s1894_s7 = inlined_call_operand.vmem [shape: f32[48,48], index: 7, kind: input, shape index: {}]   ;;  %s1895_s8 = inlined_call_operand.vmem [shape: f32[16,16], index: 8, kind: input, shape index: {}]   ;;  %s1896_s9 = inlined_call_operand.vmem [shape: f32[16,16], index: 9, kind: input, shape index: {}]   ;;  %s1897_s10 = inlined_call_operand.vmem [shape: bf16[48,768], index: 10, kind: input, shape index: {}]   ;;  %s1898_s11 = inlined_call_operand.vmem [shape: f32[1,256], index: 11, kind: input, shape index: {}]   ;;  %s1899_s12 = inlined_call_operand.vmem [shape: f32[1,16], index: 12, kind: input, shape index: {}]   ;;  %s1900_s13 = inlined_call_operand.vmem [shape: f32[256,10], index: 13, kind: input, shape index: {}]   ;;  %s1901_s14 = inlined_call_operand.vmem [shape: f32[1,10], index: 14, kind: input, shape index: {}]   ;;  %s1902_s15 = inlined_call_operand.hbm [shape: f32[2,1,10], index: 15, kind: output, shape index: {}]  }
   0x1   :  { %1908 = sst [smem:[#allocation10_spill]] %s1887_s0 }
   0x2   :  { %20 = vsyncpa [#allocation3], 0 }
   0x3   :  { %22 = vsyncpa [#allocation3 + $0x1], 0  ;;  %s1481_s18 = smov 0   ;;  %s1483_s19 = smov 0  }
   0x4   :  { %s1485_s20 = smov 0   ;;  %s1487_s21 = smov 0  }
   0x5 LB: > { %1909 = sst [smem:[#allocation5_spill]] %s1387_s18  ;;  %s1502_s22 = sadd.s32 4294967295, %s1399_s21   ;;  %s1399_s21 = sphi %s1487_s21, %s1919_s21   ;;  %s1395_s20 = sphi %s1485_s20, %s1921_s20   ;;  %s1391_s19 = sphi %s1483_s19, %s1923_s19   ;;  %s1387_s18 = sphi %s1481_s18, %s1922_s18  }
   0x6   : > { %1910 = sst [smem:[#allocation6_spill]] %s1395_s20  ;;  %s1160_s23 = sadd.s32 4294967294, %s1399_s21  }
   0x7   : > { %s1506_s24 = sadd.s32 1, %s1399_s21   ;;  %s355_s25 = sadd.s32 1, %s1395_s20 }
   0x8   : > { %1911 = sst [smem:[#allocation7_spill]] %s1506_s24  ;;  %s352_s26 = ssub.s32 %s1399_s21, %s1506_s24 }
   0x9   : > { %p365_p0 = scmp.ne.s32.totalorder %s1395_s20, %s1391_s19  ;;  %p353_p1 = scmp.eq.s32.totalorder %s352_s26, 0 }
   0xa   : > { %p366_p2 = scmp.eq.s32.totalorder %s1502_s22, 1  ;;  %p371_p3 = scmp.ne.s32.totalorder %s1391_s19, %s1387_s18 }
   0xb   : > { %p372_p4 = scmp.eq.s32.totalorder %s1160_s23, 1  ;;  %p1163_p7 = scmp.ge.s32.totalorder %s1399_s21, 1 }
   0xc   : > { %s1517_s27 = scalar_select %p353_p1, %s1395_s20, %s355_s25  }
   0xd   : > { %p1519_p5 = por %p366_p2, %p365_p0  ;;  %p1523_p6 = por %p372_p4, %p371_p3 }
   0xe   : > { %1912 = sst [smem:[#allocation8_spill]] %s1517_s27  ;;  %p441_p8 = scmp.lt.s32.totalorder %s1399_s21, 3 }
   0xf   : > { %s1914_s29 = scalar_select %p1523_p6, 1, 0 }
  0x10   : > { %p442_p9 = pnand %p1163_p7, %p441_p8 }
  0x11   : > { %1915 = sst [smem:[#allocation9_spill]] %s1914_s29  ;;  %s1164_s25 = sshll.u32 (!%p442_p9), %s1502_s22, 1 }
  0x12   : > { %445 = sbr.rel (%p442_p9) target bundleno = 1183 (0x49f), region = 80  ;;  %p489_p10 = scmp.lt.s32.totalorder (!%p442_p9), %s1164_s25, 3 }
  0x13   : > { %s1916_s0 = sld [smem:[#allocation10_spill]] (!%p442_p9)  ;;  %s1101_s27 = scalar_lea.hbm (!%p442_p9), %s1902_s15, %s1502_s22 }
  0x14   : > { %s1105_s24 = sshll.u32 (!%p442_p9), %s1101_s27, 4  ;;  %s1357_s17 = scalar_lea.hbm (!%p442_p9), %s1902_s15, 2  ;;  %s1106_s24 = int_to_ptr.hbm [resolvable:$true] %s1105_s24 }
  0x17   : > { %v504_v0 = vld [vmem:[%s1888_s1 + $0x28] sm:$0xff]  ;;  %v503_v1 = vld [vmem:[%s1888_s1 + $0x20] sm:$0xff]  ;;  %v502_v2 = vld [vmem:[%s1888_s1 + $0x18] sm:$0xff]  ;;  %s1925_s25 = smov (!%p489_p10, %s1164_s25), 3  ;;  %vm505_vm0 = vcmask 392192   ;;  %vm539_vm1 = vcmask 130048  }
  0x18   : > { %522 = vmatpush.msra.mxu0 %v504_v0  ;;  %v501_v3 = vld [vmem:[%s1888_s1 + $0x10] sm:$0xff]  ;;  %s1165_s30 = sshll.u32 %s1925_s25, 3  ;;  %v500_v4 = vld [vmem:[%s1888_s1 + $0x8] sm:$0xff]  ;;  %v499_v6 = vld [vmem:[%s1888_s1] sm:$0xff]  ;;  %vm1090_vm4 = vcmask 73728   ;;  %s1351_s25 = sshra.s32 %s1106_s24, 4  ;;  %s1352_s25 = int_to_ptr.hbm [resolvable:$true] %s1351_s25 }
  0x19   : > { %s492_s18 = scalar_lea.vmem %s1916_s0, %s1165_s30  ;;  %v535_v12 = vld [vmem:[%s1889_s2] sm:$0xff]  ;;  %v536_v13 = vld [vmem:[%s1889_s2 + $0x8] sm:$0xff]  ;;  %v582_v16 = vld [vmem:[%s1894_s7 + $0x18] sm:$0xff]  ;;  %s1353_s30 = scalar_lea.hbm %s1352_s25, 1 }
  0x1a   : > { %523 = vmatpush.msra.mxu0 %v503_v1  ;;  %v495_v5 = vld [vmem:[%s492_s18] sm:$0xff]  ;;  %v496_v8 = vld [vmem:[%s492_s18 + $0x8] sm:$0xff]  ;;  %v581_v17 = vld [vmem:[%s1894_s7 + $0x10] sm:$0xff]  ;;  %s486_s18 = sand.u32 1, %s1391_s19   ;;  %p1354_p11 = scmp.ne.s32.totalorder %s1352_s25, %s1353_s30 }
  0x1b   : > { %v497_v7 = vmul.f32 255.0, %v495_v5  ;;  %v498_v9 = vmul.f32 255.0, %v496_v8  ;;  %v584_v14 = vld [vmem:[%s1894_s7 + $0x28] sm:$0xff]  ;;  %v583_v15 = vld [vmem:[%s1894_s7 + $0x20] sm:$0xff]  ;;  %v1279_v53 = vld [vmem:[%s1897_s10 + $0x74] sm:$0xf0]  ;;  %p1358_p0 = scmp.lt.s32.totalorder %s1352_s25, %s1902_s15  ;;  %p1359_p1 = scmp.lt.s32.totalorder %s1357_s17, %s1353_s30 }
  0x1c   : > { %524 = vmatpush.msra.mxu0 %v502_v2  ;;  %601 = vmatpush.msra.mxu2 %v584_v14  ;;  %v580_v18 = vld [vmem:[%s1894_s7 + $0x8] sm:$0xff]  ;;  %v579_v19 = vld [vmem:[%s1894_s7] sm:$0xff]  ;;  %v1226_v56 = vld [vmem:[%s1897_s10 + $0x78] sm:$0xf0]  ;;  %s487_s26 = scalar_lea.vmem [#allocation2], %s486_s18  ;;  %s1093_s29 = scalar_lea.sflag [#allocation3], %s486_s18 }
  0x1d   : > { %v537_v20 = vld [vmem:[%s1891_s4] sm:$0xff]  ;;  %v538_v26 = vld [vmem:[%s1891_s4 + $0x8] sm:$0xff]  ;;  %v1200_v0 = vld [vmem:[%s1897_s10 + $0x30] sm:$0xf]  ;;  %s1103_s20 = sshll.u32 %s487_s26, 4  ;;  %p1355_p12 = pnand %p1354_p11, %p1519_p5  ;;  %s1104_s20 = int_to_ptr.vmem [resolvable:$true] %s1103_s20 }
  0x1e   : > { %525 = vmatpush.msra.mxu0 %v501_v3  ;;  %602 = vmatpush.msra.mxu2 %v583_v15  ;;  %v569_v22 = vld [vmem:[%s1892_s5] sm:$0xff]  ;;  %v570_v29 = vld [vmem:[%s1892_s5 + $0x8] sm:$0xff]  ;;  %v1270_v2 = vld [vmem:[%s1897_s10 + $0x34] sm:$0xf]  ;;  %p1360_p2 = por %p1359_p1, %p1358_p0 }
  0x1f   : > { %v575_v36 = vld [vmem:[%s1893_s6] sm:$0xff]  ;;  %v576_v45 = vld [vmem:[%s1893_s6 + $0x8] sm:$0xff]  ;;  %v1208_v5 = vld [vmem:[%s1897_s10 + $0x38] sm:$0xf]  ;;  %p1356_p13 = pneg %p1355_p12 }
  0x20   : > { %526 = vmatpush.msra.mxu0 %v500_v4  ;;  %603 = vmatpush.msra.mxu2 %v582_v16  ;;  %v614_v50 = vld [vmem:[%s1890_s3] sm:$0xff]  ;;  %v615_v51 = vld [vmem:[%s1890_s3 + $0x8] sm:$0xff]  ;;  %v1178_v16 = vld [vmem:[%s1897_s10 + $0x18] sm:$0xf0] }
  0x21   : > { %v1224_v52 = vld [vmem:[%s1897_s10 + $0x60] sm:$0xf]  ;;  %v1276_v54 = vld [vmem:[%s1897_s10 + $0x64] sm:$0xf]  ;;  %v1232_v57 = vld [vmem:[%s1897_s10 + $0x68] sm:$0xf]  ;;  %p1361_p3 = pnand %p1360_p2, %p1356_p13 }
  0x22   : > { %527 = vmatpush.msra.mxu0 %v499_v6  ;;  %604 = vmatpush.msra.mxu2 %v581_v17  ;;  %v1225_v55 = vor.u32 %v1279_v53, %v1224_v52  ;;  %v1280_v58 = vld [vmem:[%s1897_s10 + $0x7c] sm:$0xf0]  ;;  %v1229_v59 = vor.u32 %v1276_v54, %v1226_v56  ;;  %v1277_v61 = vld [vmem:[%s1897_s10 + $0x6c] sm:$0xf]  ;;  %v1234_v62 = vld [vmem:[%s1897_s10 + $0x80] sm:$0xf0] }
  0x23   : > { %1166 = vmatmul.msk.f32.vlgmr.msra.gmra.mxu0 %vm505_vm0, %v497_v7  ;;  %v1233_v60 = vor.u32 %v1280_v58, %v1232_v57  ;;  %v1237_v63 = vor.u32 %v1277_v61, %v1234_v62  ;;  %v1273_v1 = vld [vmem:[%s1897_s10 + $0x44] sm:$0xf0]  ;;  %v1202_v4 = vld [vmem:[%s1897_s10 + $0x48] sm:$0xf0]  ;;  %v1274_v6 = vld [vmem:[%s1897_s10 + $0x4c] sm:$0xf0] }
  0x24   : > { %605 = vmatpush.msra.mxu2 %v580_v18  ;;  %768 = vmatpush.bf16.msra.mxu1 %v1225_v55  ;;  %v1201_v3 = vor.u32 %v1273_v1, %v1200_v0  ;;  %v1205_v7 = vor.u32 %v1270_v2, %v1202_v4  ;;  %v1209_v8 = vor.u32 %v1274_v6, %v1208_v5  ;;  %v1264_v14 = vld [vmem:[%s1897_s10 + $0x4] sm:$0xf]  ;;  %v1184_v17 = vld [vmem:[%s1897_s10 + $0x8] sm:$0xf]  ;;  %v1268_v18 = vld [vmem:[%s1897_s10 + $0x1c] sm:$0xf0] }
  0x25   : > { %782 = vmatpush.bf16.msra.mxu3 %v1229_v59  ;;  %v847_v56 = vld [vmem:[%s1895_s8] sm:$0xff]  ;;  %v848_v59 = vld [vmem:[%s1895_s8 + $0x8] sm:$0xff]  ;;  %v1048_v6 = vld [vmem:[%s1900_s13 + $0xf8] sm:$0xff] }
  0x26   : > { %606 = vmatpush.msra.mxu2 %v579_v19  ;;  %v1181_v19 = vor.u32 %v1264_v14, %v1178_v16  ;;  %v901_v62 = vld [vmem:[%s1896_s9] sm:$0xff]  ;;  %v902_v0 = vld [vmem:[%s1896_s9 + $0x8] sm:$0xff] }
  0x27   : > { %v1029_v14 = vld [vmem:[%s1900_s13 + $0x60] sm:$0xff] }
  0x28   : > { %769 = vmatpush.bf16.msra.mxu1 %v1201_v3  ;;  %v1770_v16 = vld [vmem:[%s1898_s11] sm:$0x3] }
  0x29   : > { %783 = vmatpush.bf16.msra.mxu3 %v1205_v7  ;;  %v1047_v7 = vld [vmem:[%s1900_s13 + $0xf0] sm:$0xff] }
  0x2b   : > { %1167 = vmatmul.msk.f32.gmra.mxu0 %vm505_vm0, %v498_v9  ;;  %v1271_v9 = vld [vmem:[%s1897_s10 + $0x3c] sm:$0xf] }
  0x2d   : > { %784 = vmatpush.bf16.msra.mxu3 %v1181_v19 }
  0xa0   : > { %v529_v10 = vpop.f32.mrf.mxu0 }
  0xa8   : > { %v532_v11 = vpop.f32.mrf.mxu0 }
  0xa9   : > { %560 = vmatpush.msrb.mxu0 %v532_v11 }
  0xab   : > { %561 = vmatpush.msrb.mxu0 %v529_v10  ;;  %v1210_v10 = vld [vmem:[%s1897_s10 + $0x50] sm:$0xf0] }
  0xac   : > { %1168 = vmatmul.msk.f32.vlgmr.msrb.gmra.mxu0 %vm539_vm1, %v535_v12  ;;  %v1213_v11 = vor.u32 %v1271_v9, %v1210_v10  ;;  %v1176_v12 = vld [vmem:[%s1897_s10] sm:$0xf]  ;;  %v1031_v9 = vld [vmem:[%s1900_s13 + $0x70] sm:$0xff] }
  0xad   : > { %796 = vmatpush.bf16.msra.mxu0 %v1233_v60 }
  0xb1   : > { %797 = vmatpush.bf16.msra.mxu0 %v1209_v8  ;;  %v1032_v8 = vld [vmem:[%s1900_s13 + $0x78] sm:$0xff] }
  0xb4   : > { %1169 = vmatmul.msk.f32.gmra.mxu0 %vm539_vm1, %v536_v13  ;;  %v1267_v13 = vld [vmem:[%s1897_s10 + $0x14] sm:$0xf0] }
  0xb5   : > { %v1177_v15 = vor.u32 %v1267_v13, %v1176_v12  ;;  %v1030_v12 = vld [vmem:[%s1900_s13 + $0x68] sm:$0xff]  ;;  %v1045_v13 = vld [vmem:[%s1900_s13 + $0xe0] sm:$0xff] }
  0xb7   : > { %770 = vmatpush.bf16.msra.mxu1 %v1177_v15 }
 0x129   : > { %v563_v21 = vpop.f32.mrf.mxu0 }
 0x12a   : > { %v564_v23 = vadd.f32 %v563_v21, %v537_v20  ;;  %v1185_v20 = vor.u32 %v1268_v18, %v1184_v17  ;;  %v1265_v21 = vld [vmem:[%s1897_s10 + $0xc] sm:$0xf]  ;;  %v1044_v17 = vld [vmem:[%s1900_s13 + $0xd8] sm:$0xff] }
 0x12b   : > { %v1028_v18 = vld [vmem:[%s1900_s13 + $0x58] sm:$0xff] }
 0x12c   : > { %v571_v24 = vmul.f32 %v569_v22, %v564_v23  ;;  %v1186_v22 = vld [vmem:[%s1897_s10 + $0x20] sm:$0xf0]  ;;  %798 = vmatpush.bf16.msra.mxu0 %v1185_v20 }
 0x12d   : > { %v1189_v23 = vor.u32 %v1265_v21, %v1186_v22  ;;  %v1043_v21 = vld [vmem:[%s1900_s13 + $0xd0] sm:$0xff] }
 0x12e   : > { %v1284_v25 = vcvt.f32.s32 %v571_v24  ;;  %v1282_v30 = vand.u32 2147483647, %v571_v24  ;;  %v1287_v31 = vand.u32 2147483648, %v571_v24  ;;  %v1027_v22 = vld [vmem:[%s1900_s13 + $0x50] sm:$0xff] }
 0x130   : > { %v1285_v27 = vcvt.s32.f32 %v1284_v25  ;;  %vm1283_vm2 = vcmp.lt.f32.partialorder %v1282_v30, 8388608.0  ;;  %v1281_v25 = vld [vmem:[%s1897_s10 + $0x84] sm:$0xf0]  ;;  %v1275_v30 = vld [vmem:[%s1897_s10 + $0x54] sm:$0xf0] }
 0x131   : > { %v566_v28 = vpop.f32.mrf.mxu0 }
 0x132   : > { %v567_v32 = vadd.f32 %v566_v28, %v538_v26  ;;  %v1286_v33 = vand.u32 2147483647, %v1285_v27  ;;  %v1278_v26 = vld [vmem:[%s1897_s10 + $0x74] sm:$0xf]  ;;  %v1242_v28 = vld [vmem:[%s1897_s10 + $0x88] sm:$0xf0] }
 0x134   : > { %v572_v34 = vmul.f32 %v570_v29, %v567_v32  ;;  %v1288_v35 = vor.u32 %v1287_v31, %v1286_v33  ;;  %v1216_v29 = vld [vmem:[%s1897_s10 + $0x40] sm:$0xf]  ;;  %v1245_v31 = vor.u32 %v1278_v26, %v1242_v28  ;;  %v1272_v32 = vld [vmem:[%s1897_s10 + $0x44] sm:$0xf]  ;;  %v1218_v33 = vld [vmem:[%s1897_s10 + $0x58] sm:$0xf0] }
 0x135   : > { %v1026_v28 = vld [vmem:[%s1900_s13 + $0x48] sm:$0xff] }
 0x136   : > { %v1292_v37 = vcvt.f32.s32 %v572_v34  ;;  %v1289_v38 = vsel %vm1283_vm2, %v1288_v35, %v571_v24  ;;  %v1290_v41 = vand.u32 2147483647, %v572_v34  ;;  %v1295_v42 = vand.u32 2147483648, %v572_v34  ;;  %v1240_v24 = vld [vmem:[%s1897_s10 + $0x70] sm:$0xf]  ;;  %838 = vmatpush.bf16.msrb.mxu3 %v1245_v31  ;;  %v1025_v31 = vld [vmem:[%s1900_s13 + $0x40] sm:$0xff] }
 0x137   : > { %v577_v39 = vmul.f32 %v1289_v38, %v575_v36  ;;  %v1241_v27 = vor.u32 %v1281_v25, %v1240_v24  ;;  %v1221_v35 = vor.u32 %v1272_v32, %v1218_v33  ;;  %v1192_v36 = vld [vmem:[%s1897_s10 + $0x10] sm:$0xf]  ;;  %v1266_v38 = vld [vmem:[%s1897_s10 + $0x14] sm:$0xf]  ;;  %v961_v25 = vperm.slane %v1770_v16, 0 }
 0x138   : > { %v1293_v40 = vcvt.s32.f32 %v1292_v37  ;;  %vm1291_vm3 = vcmp.lt.f32.partialorder %v1290_v41, 8388608.0  ;;  %v1269_v37 = vld [vmem:[%s1897_s10 + $0x24] sm:$0xf0] }
 0x139   : > { %1170 = vmatmul.msk.f32.vlgmr.msra.gmra.mxu2 %vm505_vm0, %v577_v39  ;;  %824 = vmatpush.bf16.msrb.mxu1 %v1241_v27  ;;  %v1194_v39 = vld [vmem:[%s1897_s10 + $0x28] sm:$0xf0] }
 0x13a   : > { %v1294_v43 = vand.u32 2147483647, %v1293_v40  ;;  %v1193_v40 = vor.u32 %v1269_v37, %v1192_v36  ;;  %839 = vmatpush.bf16.msrb.mxu3 %v1221_v35  ;;  %v1197_v41 = vor.u32 %v1266_v38, %v1194_v39  ;;  %v1042_v27 = vld [vmem:[%s1900_s13 + $0xc8] sm:$0xff]  ;;  %v1040_v35 = vld [vmem:[%s1900_s13 + $0xb8] sm:$0xff]  ;;  %v1039_v38 = vld [vmem:[%s1900_s13 + $0xb0] sm:$0xff] }
 0x13b   : > { %v1024_v37 = vld [vmem:[%s1900_s13 + $0x38] sm:$0xff] }
 0x13c   : > { %v1296_v44 = vor.u32 %v1295_v42, %v1294_v43 }
 0x13e   : > { %v1297_v46 = vsel %vm1291_vm3, %v1296_v44, %v572_v34  ;;  %v1217_v34 = vor.u32 %v1275_v30, %v1216_v29  ;;  %840 = vmatpush.bf16.msrb.mxu3 %v1197_v41  ;;  %v1041_v30 = vld [vmem:[%s1900_s13 + $0xc0] sm:$0xff] }
 0x13f   : > { %v578_v47 = vmul.f32 %v1297_v46, %v576_v45 }
 0x140   : > { %825 = vmatpush.bf16.msrb.mxu1 %v1217_v34 }
 0x141   : > { %1171 = vmatmul.msk.f32.gmra.mxu2 %vm505_vm0, %v578_v47 }
 0x144   : > { %826 = vmatpush.bf16.msrb.mxu1 %v1193_v40  ;;  %v1023_v40 = vld [vmem:[%s1900_s13 + $0x30] sm:$0xff] }
 0x1bc   : > { %v608_v48 = vpop.f32.mrf.mxu2 }
 0x1c4   : > { %v611_v49 = vpop.f32.mrf.mxu2 }
 0x1c5   : > { %636 = vmatpush.msrb.mxu2 %v611_v49 }
 0x1c7   : > { %637 = vmatpush.msrb.mxu2 %v608_v48 }
 0x1c8   : > { %1172 = vmatmul.msk.f32.vlgmr.msrb.gmra.mxu2 %vm539_vm1, %v614_v50 }
 0x1c9   : > { %810 = vmatpush.bf16.msra.mxu2 %v1237_v63 }
 0x1cd   : > { %811 = vmatpush.bf16.msra.mxu2 %v1213_v11  ;;  %v1046_v11 = vld [vmem:[%s1900_s13 + $0xe8] sm:$0xff] }
 0x1d0   : > { %1173 = vmatmul.msk.f32.gmra.mxu2 %vm539_vm1, %v615_v51 }
 0x1d1   : > { %812 = vmatpush.bf16.msra.mxu2 %v1189_v23 }
 0x24b   : > { %v639_v42 = vpop.f32.mrf.mxu2 }
 0x24c   : > { %v640_v43 = vadd.f32 128.0, %v639_v42  ;;  %v1038_v42 = vld [vmem:[%s1900_s13 + $0xa8] sm:$0xff] }
 0x24e   : > { %v645_v44 = vmax.f32 %v640_v43, 0.0 }
 0x250   : > { %v647_v47 = vmin.f32 %v645_v44, 255.0  ;;  %v973_v44 = vld [vmem:[%s1899_s12] sm:$0x1] }
 0x252   : > { %v649_v50 = vmul.f32 0.003921569, %v647_v47 }
 0x253   : > { %v642_v45 = vpop.f32.mrf.mxu2 }
 0x254   : > { %v643_v46 = vadd.f32 128.0, %v642_v45  ;;  %v1022_v45 = vld [vmem:[%s1900_s13 + $0x28] sm:$0xff] }
 0x256   : > { %v646_v48 = vmax.f32 %v643_v46, 0.0  ;;  %v1037_v46 = vld [vmem:[%s1900_s13 + $0xa0] sm:$0xff] }
 0x258   : > { %v648_v49 = vmin.f32 %v646_v48, 255.0 }
 0x25a   : > { %v650_v51 = vmul.f32 0.003921569, %v648_v49  ;;  %v962_v49 = vperm.slane %v1770_v16, 1 }
 0x25c   : > { %v651_v52 = vpack.c.bf16 %v650_v51, %v649_v50  ;;  %v1021_v50 = vld [vmem:[%s1900_s13 + $0x20] sm:$0xff] }
 0x25e   : > { %1246 = vmatmul.msk.bf16.vlgmr.msra.gmra.mxu1 %vm505_vm0, %v651_v52  ;;  %1247 = vmatmul.msk.bf16.vlgmr.msra.gmra.mxu3 %vm505_vm0, %v651_v52 }
 0x25f   : > { %1248 = vmatmul.msk.bf16.vlgmr.msra.gmra.mxu0 %vm505_vm0, %v651_v52  ;;  %1249 = vmatmul.msk.bf16.vlgmr.msra.gmra.mxu2 %vm505_vm0, %v651_v52 }
 0x26e   : > { %1250 = vmatmul.msk.bf16.vlgmr.msrb.gmra.mxu1 %vm505_vm0, %v651_v52  ;;  %1251 = vmatmul.msk.bf16.vlgmr.msrb.gmra.mxu3 %vm505_vm0, %v651_v52  ;;  %v1036_v52 = vld [vmem:[%s1900_s13 + $0x98] sm:$0xff] }
 0x2db   : > { %v772_v53 = vpop.f32.mrf.mxu1 }
 0x2dc   : > { %v800_v1 = vpop.f32.mrf.mxu0 }
 0x2e1   : > { %v786_v54 = vpop.f32.mrf.mxu3 }
 0x2e2   : > { %v814_v3 = vpop.f32.mrf.mxu2 }
 0x2e3   : > { %v774_v55 = vpop.f32.mrf.mxu1 }
 0x2e4   : > { %869 = vmatpush.msrb.mxu0 %v774_v55  ;;  %v802_v2 = vpop.f32.mrf.mxu0  ;;  %v1035_v55 = vld [vmem:[%s1900_s13 + $0x90] sm:$0xff] }
 0x2e6   : > { %870 = vmatpush.msrb.mxu0 %v772_v53 }
 0x2e7   : > { %1252 = vmatmul.msk.f32.vlgmr.msrb.gmra.mxu0 %vm539_vm1, %v847_v56 }
 0x2e9   : > { %v788_v57 = vpop.f32.mrf.mxu3 }
 0x2ea   : > { %892 = vmatpush.msrb.mxu2 %v788_v57  ;;  %v1741_v5 = vpop.f32.mrf.mxu2 }
 0x2eb   : > { %v828_v58 = vpop.f32.mrf.mxu1 }
 0x2ec   : > { %893 = vmatpush.msrb.mxu2 %v786_v54  ;;  %v1020_v54 = vld [vmem:[%s1900_s13 + $0x18] sm:$0xff] }
 0x2ed   : > { %1254 = vmatmul.msk.f32.vlgmr.msrb.gmra.mxu2 %vm539_vm1, %v847_v56 }
 0x2ef   : > { %1253 = vmatmul.msk.f32.gmra.mxu0 %vm539_vm1, %v848_v59 }
 0x2f1   : > { %v842_v60 = vpop.f32.mrf.mxu3 }
 0x2f3   : > { %v830_v61 = vpop.f32.mrf.mxu1 }
 0x2f4   : > { %923 = vmatpush.msra.mxu1 %v830_v61  ;;  %v1019_v61 = vld [vmem:[%s1900_s13 + $0x10] sm:$0xff] }
 0x2f5   : > { %1255 = vmatmul.msk.f32.gmra.mxu2 %vm539_vm1, %v848_v59 }
 0x2f6   : > { %924 = vmatpush.msra.mxu1 %v828_v58  ;;  %v1034_v58 = vld [vmem:[%s1900_s13 + $0x88] sm:$0xff] }
 0x2f7   : > { %1256 = vmatmul.msk.f32.vlgmr.msra.gmra.mxu1 %vm539_vm1, %v901_v62 }
 0x2f8   : > { %1050 = vmatpush.msrb.mxu1 %v1032_v8 }
 0x2f9   : > { %v844_v63 = vpop.f32.mrf.mxu3 }
 0x2fa   : > { %946 = vmatpush.msra.mxu3 %v844_v63  ;;  %1051 = vmatpush.msrb.mxu1 %v1031_v9  ;;  %v1018_v63 = vld [vmem:[%s1900_s13 + $0x8] sm:$0xff] }
 0x2fc   : > { %947 = vmatpush.msra.mxu3 %v842_v60  ;;  %1052 = vmatpush.msrb.mxu1 %v1030_v12 }
 0x2fd   : > { %1258 = vmatmul.msk.f32.vlgmr.msra.gmra.mxu3 %vm539_vm1, %v901_v62  ;;  %v1033_v62 = vld [vmem:[%s1900_s13 + $0x80] sm:$0xff] }
 0x2fe   : > { %1070 = vmatpush.msrb.mxu3 %v1048_v6  ;;  %1053 = vmatpush.msrb.mxu1 %v1029_v14 }
 0x2ff   : > { %1257 = vmatmul.msk.f32.gmra.mxu1 %vm539_vm1, %v902_v0 }
 0x300   : > { %1071 = vmatpush.msrb.mxu3 %v1047_v7  ;;  %1054 = vmatpush.msrb.mxu1 %v1028_v18 }
 0x302   : > { %1072 = vmatpush.msrb.mxu3 %v1046_v11  ;;  %1055 = vmatpush.msrb.mxu1 %v1027_v22 }
 0x304   : > { %1073 = vmatpush.msrb.mxu3 %v1045_v13  ;;  %1056 = vmatpush.msrb.mxu1 %v1026_v28 }
 0x305   : > { %1259 = vmatmul.msk.f32.gmra.mxu3 %vm539_vm1, %v902_v0  ;;  %v1017_v0 = vld [vmem:[%s1900_s13] sm:$0xff] }
 0x306   : > { %1074 = vmatpush.msrb.mxu3 %v1044_v17  ;;  %1057 = vmatpush.msrb.mxu1 %v1025_v31 }
 0x308   : > { %1075 = vmatpush.msrb.mxu3 %v1043_v21  ;;  %1058 = vmatpush.msrb.mxu1 %v1024_v37 }
 0x30a   : > { %1076 = vmatpush.msrb.mxu3 %v1042_v27  ;;  %1059 = vmatpush.msrb.mxu1 %v1023_v40 }
 0x30c   : > { %1077 = vmatpush.msrb.mxu3 %v1041_v30  ;;  %1060 = vmatpush.msrb.mxu1 %v1022_v45 }
 0x30e   : > { %1078 = vmatpush.msrb.mxu3 %v1040_v35  ;;  %1061 = vmatpush.msrb.mxu1 %v1021_v50 }
 0x310   : > { %1079 = vmatpush.msrb.mxu3 %v1039_v38  ;;  %1062 = vmatpush.msrb.mxu1 %v1020_v54 }
 0x312   : > { %1080 = vmatpush.msrb.mxu3 %v1038_v42  ;;  %1063 = vmatpush.msrb.mxu1 %v1019_v61 }
 0x314   : > { %1081 = vmatpush.msrb.mxu3 %v1037_v46  ;;  %1064 = vmatpush.msrb.mxu1 %v1018_v63 }
 0x316   : > { %1082 = vmatpush.msrb.mxu3 %v1036_v52  ;;  %1065 = vmatpush.msrb.mxu1 %v1017_v0 }
 0x318   : > { %1083 = vmatpush.msrb.mxu3 %v1035_v55 }
 0x31a   : > { %1084 = vmatpush.msrb.mxu3 %v1034_v58 }
 0x31c   : > { %1085 = vmatpush.msrb.mxu3 %v1033_v62 }
 0x364   : > { %v872_v4 = vpop.f32.mrf.mxu0 }
 0x365   : > { %v873_v19 = vadd.f32 %v872_v4, %v800_v1 }
 0x36c   : > { %v875_v15 = vpop.f32.mrf.mxu0 }
 0x36d   : > { %v876_v23 = vadd.f32 %v875_v15, %v802_v2 }
 0x370   : > { %v895_v20 = vpop.f32.mrf.mxu2 }
 0x371   : > { %v896_v43 = vadd.f32 %v895_v20, %v814_v3  ;;  %v1049_v3 = vld [vmem:[%s1901_s14] sm:$0x1] }
 0x374   : > { %v926_v10 = vpop.f32.mrf.mxu1 }
 0x375   : > { %v955_v24 = vadd.f32 %v926_v10, %v873_v19 }
 0x377   : > { %v965_v32 = vadd.f32 %v961_v25, %v955_v24 }
 0x378   : > { %v898_v41 = vpop.f32.mrf.mxu2 }
 0x379   : > { %v969_v39 = vmax.f32 %v965_v32, 0.0  ;;  %v899_v47 = vadd.f32 %v898_v41, %v1741_v5 }
 0x37c   : > { %v929_v26 = vpop.f32.mrf.mxu1 }
 0x37d   : > { %v957_v29 = vadd.f32 %v929_v26, %v876_v23 }
 0x37f   : > { %v967_v33 = vadd.f32 %v961_v25, %v957_v29 }
 0x380   : > { %v949_v34 = vpop.f32.mrf.mxu3 }
 0x381   : > { %v971_v36 = vmax.f32 %v967_v33, 0.0  ;;  %v956_v48 = vadd.f32 %v949_v34, %v896_v43 }
 0x383   : > { %991 = vmatpush.msra.mxu0 %v971_v36  ;;  %v966_v56 = vadd.f32 %v962_v49, %v956_v48 }
 0x385   : > { %992 = vmatpush.msra.mxu0 %v969_v39  ;;  %v970_v60 = vmax.f32 %v966_v56, 0.0 }
 0x386   : > { %1260 = vmatmul.msk.f32.vlgmr.msra.gmra.mxu0 %vm539_vm1, %v973_v44 }
 0x388   : > { %v952_v51 = vpop.f32.mrf.mxu3 }
 0x389   : > { %v958_v53 = vadd.f32 %v952_v51, %v899_v47 }
 0x38b   : > { %v968_v57 = vadd.f32 %v962_v49, %v958_v53 }
 0x38d   : > { %v972_v59 = vmax.f32 %v968_v57, 0.0 }
 0x38f   : > { %1011 = vmatpush.msra.mxu2 %v972_v59 }
 0x391   : > { %1012 = vmatpush.msra.mxu2 %v970_v60 }
 0x392   : > { %1261 = vmatmul.msk.f32.vlgmr.msra.gmra.mxu2 %vm539_vm1, %v973_v44 }
 0x403   : > { %v994_v1 = vpop.f32.mrf.mxu0 }
 0x404   : > { %1066 = vmatmul.f32.vlgmr.msrb.gmra.mxu1 %v994_v1 }
 0x415   : > { %v1014_v2 = vpop.f32.mrf.mxu2 }
 0x416   : > { %1086 = vmatmul.f32.vlgmr.msrb.gmra.mxu3 %v1014_v2 }
 0x481   : > { %v1067_v4 = vpop.f32.mrf.mxu1 }
 0x482   : > { %v1068_v5 = vadd.f32 %v1067_v4, %v1049_v3 }
 0x499   : > { %v1087_v6 = vpop.f32.mrf.mxu3 }
 0x49a   : > { %v1088_v7 = vadd.f32 %v1087_v6, %v1068_v5 }
 0x49c   : > { %1091 = vst.msk [vmem:[%s487_s26] sm:$0x1] %vm1090_vm4, %v1088_v7 }
 0x49d   : > { %1364 = shalt.err (!%p1361_p3)
}
 0x49e   : > { %1298 = dma.vmem_to_hbm [thread:$0]  (%p1519_p5), %s1104_s20, 16, %s1106_s24, %s1093_s29  }
 0x49f PF: > { %s1917_s18 = sld [smem:[#allocation5_spill]]  ;;  %p1304_p4 = scmp.ge.s32.totalorder %s1399_s21, 2 }
 0x4a1   : > { %p1301_p7 = pnand %p1304_p4, %p1523_p6 }
 0x4a3   : > { %p1302_p8 = pneg %p1301_p7 }
 0x4a5   : > { %s1117_s0 = sand.u32 1, %s1917_s18  }
 0x4a6   : > { %s1118_s22 = scalar_lea.sflag [#allocation3], %s1117_s0 }
 0x4a7   : > { %1382 = dma.done.wait (%p1302_p8), %s1118_s22, 16  }
 0x4a8   : > { %1384 = vsyncadd (%p1302_p8), %s1118_s22, 4294967280  ;;  %s1919_s21 = sld [smem:[#allocation7_spill]]  ;;  %s1922_s18 = smov %s1391_s19 }
 0x4a9   : > { %s1920_s25 = sld [smem:[#allocation6_spill]] }
 0x4aa   : > { %s1921_s20 = sld [smem:[#allocation8_spill]] }
 0x4ae   : > { %p25_p9 = scmp.ge.s32.totalorder %s1919_s21, 4  }
 0x4af   : > { %s1923_s19 = smov %s1920_s25 }
 0x4b0   :  { %27 = sbr.rel (!%p25_p9) target bundleno = 5 (0x5), region = 115 }
 0x4b5   :  { %1123 = vsyncpa [#allocation3], 1 }
 0x4b6   :  { %1125 = vsyncpa [#allocation3 + $0x1], 1 }

</bundles_post_ra>
